<compile_context>
chip_gen: v6e
topology: v6e:2x2x1
jax: 0.10.0
libtpu: 0.0.40
codegen_flags: <defaults>
</compile_context>

<pallas_src>
import jax
import jax.numpy as jnp
import numpy as np
from jax.experimental import pallas as pl
from jax.experimental.pallas import tpu as pltpu

MAX_LENGTH = 15
SOS_TOKEN = 0


def decoder_kernel(enc_ref, h0_ref, ew_ref, ucat_ref, ab_ref, wcat_ref,
                   bhh_ref, va_ref, vab_ref, wout_ref, bout_ref,
                   logp_ref, hout_ref, attn_ref):
    Bt, S, H = enc_ref.shape
    Vp = ew_ref.shape[0]
    T = logp_ref.shape[0]
    H3 = 3 * H

    # ---------- loop-invariant loads & per-block precompute (hoisted) ----------
    keys = enc_ref[...]                              # (Bt, S, H)
    hidden0 = h0_ref[...]                            # (Bt, H)
    ew = ew_ref[...]                                 # (Vp, 3H) = emb @ Wih_emb + b_ih
    ucat = ucat_ref[...]                             # (H, 4H)  = [Ua^T | Wih_ctx]
    ab = ab_ref[...]                                 # (1, H)   = Ua_b + Wa_b
    wcat = wcat_ref[...]                             # (H, 4H)  = [Wa^T | Whh^T]
    bhh = bhh_ref[...]                               # (1, 3H)
    va3 = va_ref[...][:, None, :]                    # (1, 1, H)
    vab = vab_ref[...]                               # (1, 1)
    wout = wout_ref[...]                             # (H, Vp)
    bout = bout_ref[...]                             # (1, Vp)  (pad cols = -1e9)

    # keys-side precompute: single fused matmul -> Ua(keys)+biases and keys@Wih_ctx
    keys2d = keys.reshape(Bt * S, H)
    kpre = jnp.dot(keys2d, ucat, preferred_element_type=jnp.float32)   # (Bt*S, 4H)
    uk = (kpre[:, :H] + ab).reshape(Bt, S, H)                          # (Bt,S,H)
    kwc = kpre[:, H:].reshape(Bt, S, H3)                               # (Bt,S,3H)

    iota_v = jax.lax.broadcasted_iota(jnp.int32, (Bt, Vp), 1)
    onehot0 = (iota_v == SOS_TOKEN).astype(jnp.float32)                # SOS start

    # ---------- greedy decode loop ----------
    def step(i, carry):
        hidden, onehot = carry

        # GRU input projection of the embedded token (+ b_ih, folded into ew;
        # dropout == identity)
        gi_emb = jnp.dot(onehot, ew, preferred_element_type=jnp.float32)  # (Bt,3H)

        # fused hidden-state projections: attention query + GRU hidden gates
        comb = jnp.dot(hidden, wcat, preferred_element_type=jnp.float32)  # (Bt,4H)
        wq = comb[:, :H]                                                  # (Bt,H)
        gh = comb[:, H:] + bhh                                            # (Bt,3H)

        # Bahdanau attention (Wa_b/Ua_b already inside uk)
        e = jnp.tanh(wq[:, None, :] + uk)                                 # (Bt,S,H)
        scores = jnp.sum(e * va3, axis=-1) + vab                          # (Bt,S)
        m = jnp.max(scores, axis=-1, keepdims=True)
        ex = jnp.exp(scores - m)
        w = ex / jnp.sum(ex, axis=-1, keepdims=True)                      # (Bt,S)

        # context folded through the precomputed keys @ Wih_ctx
        gi = gi_emb + jnp.sum(w[:, :, None] * kwc, axis=1)                # (Bt,3H)

        # GRU cell (PyTorch gate order r, z, n)
        r = jax.nn.sigmoid(gi[:, :H] + gh[:, :H])
        z = jax.nn.sigmoid(gi[:, H:2 * H] + gh[:, H:2 * H])
        n = jnp.tanh(gi[:, 2 * H:] + r * gh[:, 2 * H:])
        hidden = (1.0 - z) * n + z * hidden                               # (Bt,H)

        # output projection + log_softmax (pad columns carry bias -1e9)
        logits = jnp.dot(hidden, wout,
                         preferred_element_type=jnp.float32) + bout       # (Bt,Vp)
        lm = jnp.max(logits, axis=-1, keepdims=True)
        lse = jnp.log(jnp.sum(jnp.exp(logits - lm), axis=-1,
                              keepdims=True)) + lm

        logp_ref[i] = logits - lse                                        # (Bt,Vp)
        attn_ref[i] = w                                                   # (Bt,S)

        # greedy next token (first-max on ties); pad logits never win
        is_max = logits == lm
        nxt = jnp.min(jnp.where(is_max, iota_v, Vp), axis=-1, keepdims=True)
        onehot_new = (iota_v == nxt).astype(jnp.float32)
        return hidden, onehot_new

    hidden_f, _ = jax.lax.fori_loop(0, T, step, (hidden0, onehot0))
    hout_ref[...] = hidden_f


def attention_decoder_forward(encoder_outputs, encoder_hidden, params):
    """encoder_outputs: (B,S,H); encoder_hidden: (1,B,H); PyTorch-shaped params."""
    B, S, H = encoder_outputs.shape
    V = params["emb"].shape[0]
    Vp = ((V + 127) // 128) * 128          # lane-dense vocab padding
    T = MAX_LENGTH
    h0 = encoder_hidden.reshape(B, H).astype(jnp.float32)

    # Pre-transpose / pre-pack weights to (in, out) fused layouts (host-side,
    # batch-invariant -> done once, never recomputed per grid block).
    wih_t = params["W_ih"].T               # (2H, 3H): rows [emb-half ; context-half]
    wih_emb = wih_t[:H]                    # (H, 3H)
    wih_ctx = wih_t[H:]                    # (H, 3H)
    ucat = jnp.concatenate([params["Ua_w"].T, wih_ctx], axis=1)           # (H, 4H)
    wcat = jnp.concatenate([params["Wa_w"].T, params["W_hh"].T], axis=1)  # (H, 4H)
    ab = (params["Ua_b"] + params["Wa_b"]).reshape(1, H)                  # (1, H)

    emb_pad = jnp.zeros((Vp, H), jnp.float32).at[:V].set(params["emb"])
    # embedding folded through the GRU input projection + GRU input bias
    ew_pad = emb_pad @ wih_emb + params["b_ih"].reshape(1, 3 * H)         # (Vp, 3H)

    wout_pad = jnp.zeros((H, Vp), jnp.float32).at[:, :V].set(params["out_w"].T)
    bout_pad = jnp.full((1, Vp), -1e9, jnp.float32).at[0, :V].set(params["out_b"])

    inputs = [
        encoder_outputs.astype(jnp.float32), h0,
        ew_pad, ucat, ab, wcat,
        params["b_hh"].reshape(1, 3 * H),
        params["Va_w"].reshape(1, H), params["Va_b"].reshape(1, 1),
        wout_pad, bout_pad,
    ]

    # Batch-parallel grid axis (decode recurrence is independent across rows).
    Bt = min(B, 8)
    nb = pl.cdiv(B, Bt)

    def _full_spec(a):
        return pl.BlockSpec(a.shape, lambda i, nd=a.ndim: (0,) * nd)

    in_specs = [
        pl.BlockSpec((Bt, S, H), lambda i: (i, 0, 0)),     # encoder outputs
        pl.BlockSpec((Bt, H), lambda i: (i, 0)),           # initial hidden
    ] + [_full_spec(a) for a in inputs[2:]]                # weights: full arrays

    out_shapes = (
        jax.ShapeDtypeStruct((T, B, Vp), jnp.float32),     # log-probs (step-major)
        jax.ShapeDtypeStruct((B, H), jnp.float32),         # final hidden
        jax.ShapeDtypeStruct((T, B, S), jnp.float32),      # attention weights
    )
    out_specs = (
        pl.BlockSpec((T, Bt, Vp), lambda i: (0, i, 0)),
        pl.BlockSpec((Bt, H), lambda i: (i, 0)),
        pl.BlockSpec((T, Bt, S), lambda i: (0, i, 0)),
    )

    logp_t, h_final, attn_t = pl.pallas_call(
        decoder_kernel,
        grid=(nb,),
        in_specs=in_specs,
        out_specs=out_specs,
        out_shape=out_shapes,
        compiler_params=pltpu.CompilerParams(
            dimension_semantics=("parallel",)),
    )(*inputs)

    logp = jnp.transpose(logp_t, (1, 0, 2))[:, :, :V]       # (B, T, V)
    attn = jnp.transpose(attn_t, (1, 0, 2))                 # (B, T, S)
    return logp, h_final.reshape(1, B, H), attn


def reference_forward(encoder_outputs, encoder_hidden, p):
    """Pure-JAX reference mirroring the PyTorch forward (greedy decode)."""
    B, S, H = encoder_outputs.shape
    hidden = encoder_hidden[0]
    keys = encoder_outputs
    dec_in = jnp.zeros((B,), jnp.int32)
    logps, attns = [], []
    for _ in range(MAX_LENGTH):
        emb = p["emb"][dec_in]
        wq = hidden @ p["Wa_w"].T + p["Wa_b"]
        e = jnp.tanh(wq[:, None, :] + (keys @ p["Ua_w"].T + p["Ua_b"]))
        scores = jnp.einsum("bsh,h->bs", e, p["Va_w"][0]) + p["Va_b"][0]
        w = jax.nn.softmax(scores, axis=-1)
        context = jnp.einsum("bs,bsh->bh", w, keys)
        x = jnp.concatenate([emb, context], axis=-1)
        gi = x @ p["W_ih"].T + p["b_ih"]
        gh = hidden @ p["W_hh"].T + p["b_hh"]
        r = jax.nn.sigmoid(gi[:, :H] + gh[:, :H])
        z = jax.nn.sigmoid(gi[:, H:2 * H] + gh[:, H:2 * H])
        n = jnp.tanh(gi[:, 2 * H:] + r * gh[:, 2 * H:])
        hidden = (1.0 - z) * n + z * hidden
        logits = hidden @ p["out_w"].T + p["out_b"]
        logps.append(jax.nn.log_softmax(logits, axis=-1)[:, None, :])
        attns.append(w[:, None, :])
        dec_in = jnp.argmax(logits, axis=-1)
    return (jnp.concatenate(logps, axis=1), hidden[None],
            jnp.concatenate(attns, axis=1))


def make_params(key, hidden_size, output_size):
    ks = jax.random.split(key, 12)
    s = 0.1
    H, V = hidden_size, output_size
    return {
        "emb":  s * jax.random.normal(ks[0], (V, H), jnp.float32),
        "Wa_w": s * jax.random.normal(ks[1], (H, H), jnp.float32),
        "Wa_b": s * jax.random.normal(ks[2], (H,), jnp.float32),
        "Ua_w": s * jax.random.normal(ks[3], (H, H), jnp.float32),
        "Ua_b": s * jax.random.normal(ks[4], (H,), jnp.float32),
        "Va_w": s * jax.random.normal(ks[5], (1, H), jnp.float32),
        "Va_b": s * jax.random.normal(ks[6], (1,), jnp.float32),
        "W_ih": s * jax.random.normal(ks[7], (3 * H, 2 * H), jnp.float32),
        "b_ih": s * jax.random.normal(ks[8], (3 * H,), jnp.float32),
        "W_hh": s * jax.random.normal(ks[9], (3 * H, H), jnp.float32),
        "b_hh": s * jax.random.normal(ks[10], (3 * H,), jnp.float32),
        "out_w": s * jax.random.normal(ks[11], (V, H), jnp.float32),
        "out_b": jnp.zeros((V,), jnp.float32),
    }


if __name__ == "__main__":
    B, S, H, V = 2, 8, 32, 32   # batch, encoder seq, hidden_size, output_size

    key = jax.random.PRNGKey(0)
    k_enc, k_hid, k_par = jax.random.split(key, 3)
    encoder_outputs = jax.random.normal(k_enc, (B, S, H), jnp.float32)
    encoder_hidden = jax.random.normal(k_hid, (1, B, H), jnp.float32)
    params = make_params(k_par, H, V)

    logp, h_final, attn = attention_decoder_forward(
        encoder_outputs, encoder_hidden, params)
    jax.block_until_ready((logp, h_final, attn))

    assert logp.shape == (B, MAX_LENGTH, V)
    assert h_final.shape == (1, B, H)
    assert attn.shape == (B, MAX_LENGTH, S)

    # Structural invariants: rows of exp(log_softmax) and attention sum to 1.
    np.testing.assert_allclose(np.sum(np.exp(np.asarray(logp)), axis=-1),
                               1.0, atol=1e-3)
    np.testing.assert_allclose(np.sum(np.asarray(attn), axis=-1),
                               1.0, atol=1e-3)

    # Numerical check against pure-JAX reference of the PyTorch forward.
    ref_logp, ref_h, ref_attn = reference_forward(
        encoder_outputs, encoder_hidden, params)
    np.testing.assert_allclose(np.asarray(logp), np.asarray(ref_logp),
                               atol=2e-3, rtol=2e-3)
    np.testing.assert_allclose(np.asarray(h_final), np.asarray(ref_h),
                               atol=2e-3, rtol=2e-3)
    np.testing.assert_allclose(np.asarray(attn), np.asarray(ref_attn),
                               atol=2e-3, rtol=2e-3)

    print("KERNEL_OK")
</pallas_src>

<mosaic_0001>
module attributes {stable_mosaic.version = 11 : i64} {
  func.func @decoder_kernel(%arg0: i32, %arg1: memref<2x8x32xf32, #tpu.memory_space<vmem>>, %arg2: memref<2x32xf32, #tpu.memory_space<vmem>>, %arg3: memref<128x96xf32, #tpu.memory_space<vmem>>, %arg4: memref<32x128xf32, #tpu.memory_space<vmem>>, %arg5: memref<1x32xf32, #tpu.memory_space<vmem>>, %arg6: memref<32x128xf32, #tpu.memory_space<vmem>>, %arg7: memref<1x96xf32, #tpu.memory_space<vmem>>, %arg8: memref<1x32xf32, #tpu.memory_space<vmem>>, %arg9: memref<1x1xf32, #tpu.memory_space<vmem>>, %arg10: memref<32x128xf32, #tpu.memory_space<vmem>>, %arg11: memref<1x128xf32, #tpu.memory_space<vmem>>, %arg12: memref<15x2x128xf32, #tpu.memory_space<vmem>>, %arg13: memref<2x32xf32, #tpu.memory_space<vmem>>, %arg14: memref<15x2x8xf32, #tpu.memory_space<vmem>>) attributes {dimension_semantics = [#tpu.dimension_semantics<parallel>], iteration_bounds = array<i64: 1>, scalar_prefetch = 0 : i64, scratch_operands = 0 : i64, tpu.core_type = #tpu.core_type<tc>, window_params = [{transform_indices = @transform_0, window_bounds = array<i64: 2, 8, 32>}, {transform_indices = @transform_1, window_bounds = array<i64: 2, 32>}, {pipeline_mode = #tpu.pipeline_mode<synchronous>, transform_indices = @transform_2, window_bounds = array<i64: 128, 96>}, {pipeline_mode = #tpu.pipeline_mode<synchronous>, transform_indices = @transform_3, window_bounds = array<i64: 32, 128>}, {pipeline_mode = #tpu.pipeline_mode<synchronous>, transform_indices = @transform_4, window_bounds = array<i64: 1, 32>}, {pipeline_mode = #tpu.pipeline_mode<synchronous>, transform_indices = @transform_5, window_bounds = array<i64: 32, 128>}, {pipeline_mode = #tpu.pipeline_mode<synchronous>, transform_indices = @transform_6, window_bounds = array<i64: 1, 96>}, {pipeline_mode = #tpu.pipeline_mode<synchronous>, transform_indices = @transform_7, window_bounds = array<i64: 1, 32>}, {pipeline_mode = #tpu.pipeline_mode<synchronous>, transform_indices = @transform_8, window_bounds = array<i64: 1, 1>}, {pipeline_mode = #tpu.pipeline_mode<synchronous>, transform_indices = @transform_9, window_bounds = array<i64: 32, 128>}, {pipeline_mode = #tpu.pipeline_mode<synchronous>, transform_indices = @transform_10, window_bounds = array<i64: 1, 128>}, {transform_indices = @transform_11, window_bounds = array<i64: 15, 2, 128>}, {transform_indices = @transform_12, window_bounds = array<i64: 2, 32>}, {transform_indices = @transform_13, window_bounds = array<i64: 15, 2, 8>}]} {
    %c0 = arith.constant 0 : index
    %c0_0 = arith.constant 0 : index
    %c0_1 = arith.constant 0 : index
    %0 = vector.load %arg1[%c0, %c0_0, %c0_1] : memref<2x8x32xf32, #tpu.memory_space<vmem>>, vector<2x8x32xf32>
    %c0_2 = arith.constant 0 : index
    %c0_3 = arith.constant 0 : index
    %1 = vector.load %arg2[%c0_2, %c0_3] : memref<2x32xf32, #tpu.memory_space<vmem>>, vector<2x32xf32>
    %c0_4 = arith.constant 0 : index
    %c0_5 = arith.constant 0 : index
    %2 = vector.load %arg3[%c0_4, %c0_5] : memref<128x96xf32, #tpu.memory_space<vmem>>, vector<128x96xf32>
    %c0_6 = arith.constant 0 : index
    %c0_7 = arith.constant 0 : index
    %3 = vector.load %arg4[%c0_6, %c0_7] : memref<32x128xf32, #tpu.memory_space<vmem>>, vector<32x128xf32>
    %c0_8 = arith.constant 0 : index
    %c0_9 = arith.constant 0 : index
    %4 = vector.load %arg5[%c0_8, %c0_9] : memref<1x32xf32, #tpu.memory_space<vmem>>, vector<1x32xf32>
    %c0_10 = arith.constant 0 : index
    %c0_11 = arith.constant 0 : index
    %5 = vector.load %arg6[%c0_10, %c0_11] : memref<32x128xf32, #tpu.memory_space<vmem>>, vector<32x128xf32>
    %c0_12 = arith.constant 0 : index
    %c0_13 = arith.constant 0 : index
    %6 = vector.load %arg7[%c0_12, %c0_13] : memref<1x96xf32, #tpu.memory_space<vmem>>, vector<1x96xf32>
    %c0_14 = arith.constant 0 : index
    %c0_15 = arith.constant 0 : index
    %7 = vector.load %arg8[%c0_14, %c0_15] : memref<1x32xf32, #tpu.memory_space<vmem>>, vector<1x32xf32>
    %8 = vector.shape_cast %7 : vector<1x32xf32> to vector<1x1x32xf32>
    %c0_16 = arith.constant 0 : index
    %c0_17 = arith.constant 0 : index
    %9 = vector.load %arg9[%c0_16, %c0_17] : memref<1x1xf32, #tpu.memory_space<vmem>>, vector<1x1xf32>
    %c0_18 = arith.constant 0 : index
    %c0_19 = arith.constant 0 : index
    %10 = vector.load %arg10[%c0_18, %c0_19] : memref<32x128xf32, #tpu.memory_space<vmem>>, vector<32x128xf32>
    %c0_20 = arith.constant 0 : index
    %c0_21 = arith.constant 0 : index
    %11 = vector.load %arg11[%c0_20, %c0_21] : memref<1x128xf32, #tpu.memory_space<vmem>>, vector<1x128xf32>
    %12 = vector.shape_cast %0 : vector<2x8x32xf32> to vector<16x32xf32>
    %cst = arith.constant dense<0.000000e+00> : vector<16x128xf32>
    %13 = tpu.matmul %12, %3, %cst {dimension_numbers = #tpu.dot_dimension_numbers<[1], [0], [0], [1], [0, 0, 1, 1], [], []>} : vector<16x32xf32>, vector<32x128xf32>, vector<16x128xf32> -> vector<16x128xf32>
    %14 = vector.extract_strided_slice %13 {offsets = [0, 0], sizes = [16, 32], strides = [1, 1]} : vector<16x128xf32> to vector<16x32xf32>
    %15 = vector.broadcast %4 : vector<1x32xf32> to vector<16x32xf32>
    %16 = arith.addf %14, %15 : vector<16x32xf32>
    %17 = vector.shape_cast %16 : vector<16x32xf32> to vector<2x8x32xf32>
    %18 = vector.extract_strided_slice %13 {offsets = [0, 32], sizes = [16, 96], strides = [1, 1]} : vector<16x128xf32> to vector<16x96xf32>
    %19 = vector.shape_cast %18 : vector<16x96xf32> to vector<2x8x96xf32>
    %20 = tpu.iota {dimensions = array<i32: 1>} : vector<2x128xi32>
    %c0_i32 = arith.constant 0 : i32
    %21 = vector.broadcast %c0_i32 : i32 to vector<2x128xi32>
    %22 = arith.cmpi eq, %20, %21 : vector<2x128xi32>
    %23 = arith.extui %22 : vector<2x128xi1> to vector<2x128xi32>
    %24 = arith.sitofp %23 : vector<2x128xi32> to vector<2x128xf32>
    %c0_i32_22 = arith.constant 0 : i32
    %c15_i32 = arith.constant 15 : i32
    %25 = arith.addi %c0_i32_22, %c15_i32 : i32
    %c1_i32 = arith.constant 1 : i32
    %26:2 = scf.for %arg15 = %c0_i32_22 to %25 step %c1_i32 iter_args(%arg16 = %1, %arg17 = %24) -> (vector<2x32xf32>, vector<2x128xf32>)  : i32 {
      %cst_26 = arith.constant dense<0.000000e+00> : vector<2x96xf32>
      %28 = tpu.matmul %arg17, %2, %cst_26 {dimension_numbers = #tpu.dot_dimension_numbers<[1], [0], [0], [1], [0, 0, 1, 1], [], []>} : vector<2x128xf32>, vector<128x96xf32>, vector<2x96xf32> -> vector<2x96xf32>
      %cst_27 = arith.constant dense<0.000000e+00> : vector<2x128xf32>
      %29 = tpu.matmul %arg16, %5, %cst_27 {dimension_numbers = #tpu.dot_dimension_numbers<[1], [0], [0], [1], [0, 0, 1, 1], [], []>} : vector<2x32xf32>, vector<32x128xf32>, vector<2x128xf32> -> vector<2x128xf32>
      %30 = vector.extract_strided_slice %29 {offsets = [0, 0], sizes = [2, 32], strides = [1, 1]} : vector<2x128xf32> to vector<2x32xf32>
      %31 = vector.extract_strided_slice %29 {offsets = [0, 32], sizes = [2, 96], strides = [1, 1]} : vector<2x128xf32> to vector<2x96xf32>
      %32 = vector.broadcast %6 : vector<1x96xf32> to vector<2x96xf32>
      %33 = arith.addf %31, %32 : vector<2x96xf32>
      %34 = vector.shape_cast %30 : vector<2x32xf32> to vector<2x1x32xf32>
      %35 = vector.broadcast %34 : vector<2x1x32xf32> to vector<2x8x32xf32>
      %36 = arith.addf %35, %17 : vector<2x8x32xf32>
      %37 = math.tanh %36 : vector<2x8x32xf32>
      %38 = vector.broadcast %8 : vector<1x1x32xf32> to vector<2x8x32xf32>
      %39 = arith.mulf %37, %38 : vector<2x8x32xf32>
      %cst_28 = arith.constant dense<0.000000e+00> : vector<2x8xf32>
      %40 = vector.multi_reduction <add>, %39, %cst_28 [2] : vector<2x8x32xf32> to vector<2x8xf32>
      %41 = vector.broadcast %9 : vector<1x1xf32> to vector<2x8xf32>
      %42 = arith.addf %40, %41 : vector<2x8xf32>
      %cst_29 = arith.constant dense<0xFF800000> : vector<2xf32>
      %43 = vector.multi_reduction <maximumf>, %42, %cst_29 [1] : vector<2x8xf32> to vector<2xf32>
      %44 = vector.shape_cast %43 : vector<2xf32> to vector<2x1xf32>
      %45 = vector.broadcast %44 : vector<2x1xf32> to vector<2x8xf32>
      %46 = arith.subf %42, %45 : vector<2x8xf32>
      %47 = math.exp %46 : vector<2x8xf32>
      %cst_30 = arith.constant dense<0.000000e+00> : vector<2xf32>
      %48 = vector.multi_reduction <add>, %47, %cst_30 [1] : vector<2x8xf32> to vector<2xf32>
      %49 = vector.shape_cast %48 : vector<2xf32> to vector<2x1xf32>
      %50 = vector.broadcast %49 : vector<2x1xf32> to vector<2x8xf32>
      %51 = arith.divf %47, %50 : vector<2x8xf32>
      %52 = vector.shape_cast %51 : vector<2x8xf32> to vector<2x8x1xf32>
      %53 = vector.broadcast %52 : vector<2x8x1xf32> to vector<2x8x96xf32>
      %54 = arith.mulf %53, %19 : vector<2x8x96xf32>
      %cst_31 = arith.constant dense<0.000000e+00> : vector<2x96xf32>
      %55 = vector.multi_reduction <add>, %54, %cst_31 [1] : vector<2x8x96xf32> to vector<2x96xf32>
      %56 = arith.addf %28, %55 : vector<2x96xf32>
      %57 = vector.extract_strided_slice %56 {offsets = [0, 0], sizes = [2, 32], strides = [1, 1]} : vector<2x96xf32> to vector<2x32xf32>
      %58 = vector.extract_strided_slice %33 {offsets = [0, 0], sizes = [2, 32], strides = [1, 1]} : vector<2x96xf32> to vector<2x32xf32>
      %59 = arith.addf %57, %58 : vector<2x32xf32>
      %60 = arith.negf %59 : vector<2x32xf32>
      %61 = math.exp %60 : vector<2x32xf32>
      %cst_32 = arith.constant 1.000000e+00 : f32
      %62 = vector.broadcast %cst_32 : f32 to vector<2x32xf32>
      %63 = arith.addf %62, %61 : vector<2x32xf32>
      %64 = arith.divf %62, %63 : vector<2x32xf32>
      %65 = vector.extract_strided_slice %56 {offsets = [0, 32], sizes = [2, 32], strides = [1, 1]} : vector<2x96xf32> to vector<2x32xf32>
      %66 = vector.extract_strided_slice %33 {offsets = [0, 32], sizes = [2, 32], strides = [1, 1]} : vector<2x96xf32> to vector<2x32xf32>
      %67 = arith.addf %65, %66 : vector<2x32xf32>
      %68 = arith.negf %67 : vector<2x32xf32>
      %69 = math.exp %68 : vector<2x32xf32>
      %cst_33 = arith.constant 1.000000e+00 : f32
      %70 = vector.broadcast %cst_33 : f32 to vector<2x32xf32>
      %71 = arith.addf %70, %69 : vector<2x32xf32>
      %72 = arith.divf %70, %71 : vector<2x32xf32>
      %73 = vector.extract_strided_slice %56 {offsets = [0, 64], sizes = [2, 32], strides = [1, 1]} : vector<2x96xf32> to vector<2x32xf32>
      %74 = vector.extract_strided_slice %33 {offsets = [0, 64], sizes = [2, 32], strides = [1, 1]} : vector<2x96xf32> to vector<2x32xf32>
      %75 = arith.mulf %64, %74 : vector<2x32xf32>
      %76 = arith.addf %73, %75 : vector<2x32xf32>
      %77 = math.tanh %76 : vector<2x32xf32>
      %cst_34 = arith.constant 1.000000e+00 : f32
      %78 = vector.broadcast %cst_34 : f32 to vector<2x32xf32>
      %79 = arith.subf %78, %72 : vector<2x32xf32>
      %80 = arith.mulf %79, %77 : vector<2x32xf32>
      %81 = arith.mulf %72, %arg16 : vector<2x32xf32>
      %82 = arith.addf %80, %81 : vector<2x32xf32>
      %cst_35 = arith.constant dense<0.000000e+00> : vector<2x128xf32>
      %83 = tpu.matmul %82, %10, %cst_35 {dimension_numbers = #tpu.dot_dimension_numbers<[1], [0], [0], [1], [0, 0, 1, 1], [], []>} : vector<2x32xf32>, vector<32x128xf32>, vector<2x128xf32> -> vector<2x128xf32>
      %84 = vector.broadcast %11 : vector<1x128xf32> to vector<2x128xf32>
      %85 = arith.addf %83, %84 : vector<2x128xf32>
      %cst_36 = arith.constant dense<0xFF800000> : vector<2xf32>
      %86 = vector.multi_reduction <maximumf>, %85, %cst_36 [1] : vector<2x128xf32> to vector<2xf32>
      %87 = vector.shape_cast %86 : vector<2xf32> to vector<2x1xf32>
      %88 = vector.broadcast %87 : vector<2x1xf32> to vector<2x128xf32>
      %89 = arith.subf %85, %88 : vector<2x128xf32>
      %90 = math.exp %89 : vector<2x128xf32>
      %cst_37 = arith.constant dense<0.000000e+00> : vector<2xf32>
      %91 = vector.multi_reduction <add>, %90, %cst_37 [1] : vector<2x128xf32> to vector<2xf32>
      %92 = vector.shape_cast %91 : vector<2xf32> to vector<2x1xf32>
      %93 = math.log %92 : vector<2x1xf32>
      %94 = arith.addf %93, %87 : vector<2x1xf32>
      %95 = vector.broadcast %94 : vector<2x1xf32> to vector<2x128xf32>
      %96 = arith.subf %85, %95 : vector<2x128xf32>
      %97 = arith.index_cast %arg15 : i32 to index
      %c0_38 = arith.constant 0 : index
      %c0_39 = arith.constant 0 : index
      %98 = vector.load %arg12[%97, %c0_38, %c0_39] : memref<15x2x128xf32, #tpu.memory_space<vmem>>, vector<1x2x128xf32>
      %99 = vector.shape_cast %98 : vector<1x2x128xf32> to vector<2x128xf32>
      %100 = vector.shape_cast %96 : vector<2x128xf32> to vector<1x2x128xf32>
      tpu.vector_store %arg12[%97, %c0_38, %c0_39], %100 {strides = array<i32>} : memref<15x2x128xf32, #tpu.memory_space<vmem>>, vector<1x2x128xf32>,
      %101 = arith.index_cast %arg15 : i32 to index
      %c0_40 = arith.constant 0 : index
      %c0_41 = arith.constant 0 : index
      %102 = vector.load %arg14[%101, %c0_40, %c0_41] : memref<15x2x8xf32, #tpu.memory_space<vmem>>, vector<1x2x8xf32>
      %103 = vector.shape_cast %102 : vector<1x2x8xf32> to vector<2x8xf32>
      %104 = vector.shape_cast %51 : vector<2x8xf32> to vector<1x2x8xf32>
      tpu.vector_store %arg14[%101, %c0_40, %c0_41], %104 {strides = array<i32>} : memref<15x2x8xf32, #tpu.memory_space<vmem>>, vector<1x2x8xf32>,
      %105 = vector.broadcast %87 : vector<2x1xf32> to vector<2x128xf32>
      %106 = arith.cmpf oeq, %85, %105 : vector<2x128xf32>
      %c128_i32 = arith.constant 128 : i32
      %107 = vector.broadcast %c128_i32 : i32 to vector<2x128xi32>
      %108 = arith.select %106, %20, %107 : vector<2x128xi1>, vector<2x128xi32>
      %cst_42 = arith.constant dense<2147483647> : vector<2xi32>
      %109 = vector.multi_reduction <minsi>, %108, %cst_42 [1] : vector<2x128xi32> to vector<2xi32>
      %110 = vector.shape_cast %109 : vector<2xi32> to vector<2x1xi32>
      %111 = vector.broadcast %110 : vector<2x1xi32> to vector<2x128xi32>
      %112 = arith.cmpi eq, %20, %111 : vector<2x128xi32>
      %113 = arith.extui %112 : vector<2x128xi1> to vector<2x128xi32>
      %114 = arith.sitofp %113 : vector<2x128xi32> to vector<2x128xf32>
      scf.yield %82, %114 : vector<2x32xf32>, vector<2x128xf32>
    }
    %c15_i32_23 = arith.constant 15 : i32
    %c0_24 = arith.constant 0 : index
    %c0_25 = arith.constant 0 : index
    %27 = vector.load %arg13[%c0_24, %c0_25] : memref<2x32xf32, #tpu.memory_space<vmem>>, vector<2x32xf32>
    tpu.vector_store %arg13[%c0_24, %c0_25], %26#0 {strides = array<i32>} : memref<2x32xf32, #tpu.memory_space<vmem>>, vector<2x32xf32>,
    return
  }
  func.func @transform_0(%arg0: i32) -> (i32, i32, i32) {
    %c0_i32 = arith.constant 0 : i32
    %c0_i32_0 = arith.constant 0 : i32
    %c0_i32_1 = arith.constant 0 : i32
    return %arg0, %c0_i32, %c0_i32_0 : i32, i32, i32
  }
  func.func @transform_1(%arg0: i32) -> (i32, i32) {
    %c0_i32 = arith.constant 0 : i32
    %c0_i32_0 = arith.constant 0 : i32
    return %arg0, %c0_i32 : i32, i32
  }
  func.func @transform_2(%arg0: i32) -> (i32, i32) {
    %c0_i32 = arith.constant 0 : i32
    %c0_i32_0 = arith.constant 0 : i32
    %c0_i32_1 = arith.constant 0 : i32
    return %c0_i32, %c0_i32_0 : i32, i32
  }
  func.func @transform_3(%arg0: i32) -> (i32, i32) {
    %c0_i32 = arith.constant 0 : i32
    %c0_i32_0 = arith.constant 0 : i32
    %c0_i32_1 = arith.constant 0 : i32
    return %c0_i32, %c0_i32_0 : i32, i32
  }
  func.func @transform_4(%arg0: i32) -> (i32, i32) {
    %c0_i32 = arith.constant 0 : i32
    %c0_i32_0 = arith.constant 0 : i32
    %c0_i32_1 = arith.constant 0 : i32
    return %c0_i32, %c0_i32_0 : i32, i32
  }
  func.func @transform_5(%arg0: i32) -> (i32, i32) {
    %c0_i32 = arith.constant 0 : i32
    %c0_i32_0 = arith.constant 0 : i32
    %c0_i32_1 = arith.constant 0 : i32
    return %c0_i32, %c0_i32_0 : i32, i32
  }
  func.func @transform_6(%arg0: i32) -> (i32, i32) {
    %c0_i32 = arith.constant 0 : i32
    %c0_i32_0 = arith.constant 0 : i32
    %c0_i32_1 = arith.constant 0 : i32
    return %c0_i32, %c0_i32_0 : i32, i32
  }
  func.func @transform_7(%arg0: i32) -> (i32, i32) {
    %c0_i32 = arith.constant 0 : i32
    %c0_i32_0 = arith.constant 0 : i32
    %c0_i32_1 = arith.constant 0 : i32
    return %c0_i32, %c0_i32_0 : i32, i32
  }
  func.func @transform_8(%arg0: i32) -> (i32, i32) {
    %c0_i32 = arith.constant 0 : i32
    %c0_i32_0 = arith.constant 0 : i32
    %c0_i32_1 = arith.constant 0 : i32
    return %c0_i32, %c0_i32_0 : i32, i32
  }
  func.func @transform_9(%arg0: i32) -> (i32, i32) {
    %c0_i32 = arith.constant 0 : i32
    %c0_i32_0 = arith.constant 0 : i32
    %c0_i32_1 = arith.constant 0 : i32
    return %c0_i32, %c0_i32_0 : i32, i32
  }
  func.func @transform_10(%arg0: i32) -> (i32, i32) {
    %c0_i32 = arith.constant 0 : i32
    %c0_i32_0 = arith.constant 0 : i32
    %c0_i32_1 = arith.constant 0 : i32
    return %c0_i32, %c0_i32_0 : i32, i32
  }
  func.func @transform_11(%arg0: i32) -> (i32, i32, i32) {
    %c0_i32 = arith.constant 0 : i32
    %c0_i32_0 = arith.constant 0 : i32
    %c0_i32_1 = arith.constant 0 : i32
    return %c0_i32, %arg0, %c0_i32_0 : i32, i32, i32
  }
  func.func @transform_12(%arg0: i32) -> (i32, i32) {
    %c0_i32 = arith.constant 0 : i32
    %c0_i32_0 = arith.constant 0 : i32
    return %arg0, %c0_i32 : i32, i32
  }
  func.func @transform_13(%arg0: i32) -> (i32, i32, i32) {
    %c0_i32 = arith.constant 0 : i32
    %c0_i32_0 = arith.constant 0 : i32
    %c0_i32_1 = arith.constant 0 : i32
    return %c0_i32, %arg0, %c0_i32_0 : i32, i32, i32
  }
}

</mosaic_0001>

<bundles_post_ra>
// kernel: tpu_custom_call.1
= control target key start
LH: loop header
LB: loop body
LE: loop exit
PB: predicated region body
PF: predicated region fallthrough
CT: control target
= control target key end

     0   :  { %s1351_s0 = inlined_call_operand.vmem [shape: f32[2,8,32], index: 0, kind: input, shape index: {}]   ;;  %s1352_s1 = inlined_call_operand.vmem [shape: f32[2,32], index: 1, kind: input, shape index: {}]   ;;  %s1353_s2 = inlined_call_operand.vmem [shape: f32[128,96], index: 2, kind: input, shape index: {}]   ;;  %s1354_s3 = inlined_call_operand.vmem [shape: f32[32,128], index: 3, kind: input, shape index: {}]   ;;  %s1355_s4 = inlined_call_operand.vmem [shape: f32[1,32], index: 4, kind: input, shape index: {}]   ;;  %s1356_s5 = inlined_call_operand.vmem [shape: f32[32,128], index: 5, kind: input, shape index: {}]   ;;  %s1357_s6 = inlined_call_operand.vmem [shape: f32[1,96], index: 6, kind: input, shape index: {}]   ;;  %s1358_s7 = inlined_call_operand.vmem [shape: f32[1,32], index: 7, kind: input, shape index: {}]   ;;  %s1359_s8 = inlined_call_operand.<no memory space> [shape: f32[1,1], index: 8, kind: input, shape index: {}]   ;;  %s1360_s9 = inlined_call_operand.vmem [shape: f32[32,128], index: 9, kind: input, shape index: {}]   ;;  %s1361_s10 = inlined_call_operand.vmem [shape: f32[1,128], index: 10, kind: input, shape index: {}]   ;;  %s1362_s11 = inlined_call_operand.hbm [shape: f32[15,2,128], index: 11, kind: output, shape index: {0}]   ;;  %s1363_s12 = inlined_call_operand.hbm [shape: f32[2,32], index: 12, kind: output, shape index: {1}]   ;;  %s1364_s13 = inlined_call_operand.vmem [shape: f32[15,2,8], index: 13, kind: output, shape index: {2}]  }
   0x1   :  { %v19_v0 = vstv %s1359_s8 }
   0x2   :  { %20 = vst [vmem:[#allocation2] sm:$0x1] %v19_v0 }
   0x3   :  { %21 = vsyncpa [#allocation4], 0 }
   0x4   :  { %22 = vsyncpa [#allocation6], 0  ;;  %v47_v1 = vld [vmem:[%s1352_s1] sm:$0x3]   ;;  %v1053_v3 = vld [vmem:[%s1353_s2 + $0x8] sm:$0xff]  ;;  %vm81_vm0 = vcmask 261120   ;;  %v171_v36 = vlaneseq }
   0x5   :  { %v1048_v2 = vld [vmem:[%s1353_s2] sm:$0xff]  ;;  %v1058_v4 = vld [vmem:[%s1353_s2 + $0x10] sm:$0xff]  ;;  %v1063_v5 = vld [vmem:[%s1353_s2 + $0x18] sm:$0xff]  ;;  %v957_v38 = vmov 0.0  }
   0x6   :  { %v1068_v6 = vld [vmem:[%s1353_s2 + $0x20] sm:$0xff]  ;;  %v1073_v7 = vld [vmem:[%s1353_s2 + $0x28] sm:$0xff]  ;;  %v1078_v8 = vld [vmem:[%s1353_s2 + $0x30] sm:$0xff]  ;;  %v1203_v37 = vand.u32 127, %v171_v36 }
   0x7   :  { %v1083_v9 = vld [vmem:[%s1353_s2 + $0x38] sm:$0xff]  ;;  %v1088_v10 = vld [vmem:[%s1353_s2 + $0x40] sm:$0xff]  ;;  %v1093_v11 = vld [vmem:[%s1353_s2 + $0x48] sm:$0xff] }
   0x8   :  { %v1098_v12 = vld [vmem:[%s1353_s2 + $0x50] sm:$0xff]  ;;  %v1103_v13 = vld [vmem:[%s1353_s2 + $0x58] sm:$0xff]  ;;  %v1108_v14 = vld [vmem:[%s1353_s2 + $0x60] sm:$0xff]  ;;  %vm173_vm1 = vcmp.eq.s32.totalorder %v1203_v37, 0 }
   0x9   :  { %v1113_v15 = vld [vmem:[%s1353_s2 + $0x68] sm:$0xff]  ;;  %v1118_v16 = vld [vmem:[%s1353_s2 + $0x70] sm:$0xff]  ;;  %v1123_v17 = vld [vmem:[%s1353_s2 + $0x78] sm:$0xff]  ;;  %v718_v39 = vsel %vm173_vm1, 1.0, %v957_v38  }
   0xa   :  { %v67_v18 = vld [vmem:[%s1354_s3 + $0x18] sm:$0xff]  ;;  %v1131_v19 = vld [vmem:[%s1356_s5] sm:$0xff]  ;;  %v1136_v20 = vld [vmem:[%s1356_s5 + $0x8] sm:$0xff] }
   0xb   :  { %v1141_v21 = vld [vmem:[%s1356_s5 + $0x10] sm:$0xff]  ;;  %v1146_v22 = vld [vmem:[%s1356_s5 + $0x18] sm:$0xff]  ;;  %v1151_v23 = vld [vmem:[%s1357_s6] ss:$0 sm:$0xff]  ;;  %761 = vmatprep.subr.mxu0 %v67_v18 }
   0xc   :  { %v1156_v24 = vld [vmem:[%s1358_s7] ss:$0 sm:$0xff]  ;;  %762 = vmatpush3.msra.mxu0 %v67_v18  ;;  %v1168_v27 = vld [vmem:[%s1360_s9 + $0x8] sm:$0xff]  ;;  %v1173_v28 = vld [vmem:[%s1360_s9 + $0x10] sm:$0xff] }
   0xd   :  { %v1158_v25 = vld [vmem:[#allocation2] ss:$0 sm:$0xff]  ;;  %v1178_v29 = vld [vmem:[%s1360_s9 + $0x18] sm:$0xff]  ;;  %v66_v31 = vld [vmem:[%s1354_s3 + $0x10] sm:$0xff] }
   0xe   :  { %v1163_v26 = vld [vmem:[%s1360_s9] sm:$0xff]  ;;  %v65_v32 = vld [vmem:[%s1354_s3 + $0x8] sm:$0xff]  ;;  %763 = vmatprep.subr.mxu0 %v66_v31 }
   0xf   :  { %v1183_v30 = vld [vmem:[%s1361_s10] ss:$0 sm:$0xff]  ;;  %764 = vmatpush3.msra.mxu0 %v66_v31  ;;  %v46_v35 = vld [vmem:[%s1351_s0 + $0x8] sm:$0xff] }
  0x10   :  { %v45_v33 = vld [vmem:[%s1351_s0] sm:$0xff]  ;;  %765 = vmatprep.subr.mxu0 %v65_v32  ;;  %s1223_s0 = smov 0  }
  0x11   :  { %v64_v34 = vld [vmem:[%s1354_s3] sm:$0xff]  ;;  %769 = vmatprep.mubr.msk.f32.mxu0 %vm81_vm0, %v45_v33  ;;  %766 = vmatpush3.msra.mxu0 %v65_v32 }
  0x12   :  { %767 = vmatprep.subr.mxu0 %v64_v34  ;;  %v717_v40 = vld [vmem:[%s1355_s4] ss:$0 sm:$0xff] }
  0x13   :  { %768 = vmatpush3.msra.mxu0 %v64_v34 }
  0x14   :  { %770 = vmatmul.mubr.msk.f32.vlgmr.msra.gmra.mxu0 %vm81_vm0, %v46_v35 }
  0xd4   :  { %v1209_v41 = vpop.f32.mrf.mxu0 }
  0xd5   :  { %v1212_v42 = vadd.f32 %v1209_v41, %v717_v40 }
  0xd6   :  { %v1214_v43 = vpop.f32.mrf.mxu0 }
  0xd7   :  { %v1217_v44 = vadd.f32 %v717_v40, %v1214_v43 }
  0xd8 LB: > { %v958_v45 = vmov 0.0   ;;  %vm959_vm2 = vmmov 0   ;;  %v960_v46 = vmov 0   ;;  %v961_v47 = vmov 1966171168   ;;  %s962_s4 = smov 32   ;;  %s955_s0 = sphi %s1223_s0, %s181_s0   ;;  %v951_v1 = vphi %v47_v1, %v1365_v1   ;;  %v947_v39 = vphi %v718_v39, %v727_v39  }
  0xd9   : > { %772 = vmatprep.subr.mxu0 %v958_v45  ;;  %780 = vmatprep.mubr.msk.f32.mxu0 %vm959_vm2, %v958_v45  ;;  %v268_v48 = vunpack.c.l.s4 %v961_v47  ;;  %v271_v50 = vshrl.u32 %v171_v36, 7  ;;  %vm338_vm3 = vcmask 1041409   ;;  %vm341_vm4 = vcmask 58368   ;;  %s726_s15 = sshll.u32 %s955_s0, 1  ;;  %s963_s18 = smov 96  }
  0xda   : > { %773 = vmatpush3.msra.mxu0 %v1146_v22  ;;  %783 = vmatprep.subr.mxu1 %v958_v45  ;;  %vm410_vm5 = vcmask 1047808   ;;  %s641_s8 = scalar_lea.vmem %s1364_s13, %s726_s15  ;;  %s964_s1 = smov 64   ;;  %vm614_vm6 = vcmask 1041408  }
  0xdb   : > { %774 = vmatprep.subr.mxu0 %v958_v45  ;;  %784 = vmatpush3.msra.mxu1 %v1123_v17  ;;  %v269_v49 = vunpack.c.0.s8 %v268_v48  ;;  %v291_v54 = vsub.s32 0, %v271_v50  ;;  %v332_v38 = vsub.s32 %v1203_v37, %v271_v50  ;;  %s629_s5 = scalar_lea.vmem [#allocation3], %s726_s15  ;;  %s181_s0 = sadd.s32 1, %s955_s0  }
  0xdc   : > { %775 = vmatpush3.msra.mxu0 %v1141_v21  ;;  %785 = vmatprep.subr.mxu1 %v958_v45  ;;  %p178_p0 = scmp.ge.s32.totalorder %s181_s0, 15  }
  0xdd   : > { %776 = vmatprep.subr.mxu0 %v958_v45  ;;  %786 = vmatpush3.msra.mxu1 %v1118_v16  ;;  %v272_v51 = vsub.s32 %v269_v49, %v271_v50  ;;  %vm664_vm10 = vcmask (%p178_p0), 254976   ;;  %s965_s19 = smov (%p178_p0), [#allocation3]  }
  0xde   : > { %777 = vmatpush3.msra.mxu0 %v1136_v20  ;;  %787 = vmatprep.subr.mxu1 %v958_v45  ;;  %s671_s6 = sshll.u32 (%p178_p0), %s965_s19, 4  ;;  %s672_s6 = int_to_ptr.vmem [resolvable:$true] %s671_s6 }
  0xdf   : > { %778 = vmatprep.subr.mxu0 %v958_v45  ;;  %788 = vmatpush3.msra.mxu1 %v1113_v15  ;;  %s889_s20 = scalar_lea.vmem (%p178_p0), %s672_s6, 480  ;;  %p894_p2 = scmp.lt.s32.totalorder (%p178_p0), %s672_s6, %s672_s6 }
  0xe0   : > { %779 = vmatpush3.msra.mxu0 %v1131_v19  ;;  %789 = vmatprep.subr.mxu1 %v958_v45  ;;  %p890_p1 = scmp.ne.s32.totalorder (%p178_p0), %s672_s6, %s889_s20  ;;  %p895_p3 = scmp.lt.s32.totalorder (%p178_p0), %s889_s20, %s889_s20 }
  0xe1   : > { %781 = vmatmul.mubr.msk.f32.vlgmr.msra.gmra.mxu0 %vm81_vm0, %v951_v1  ;;  %790 = vmatpush3.msra.mxu1 %v1108_v14 }
  0xe2   : > { %791 = vmatprep.subr.mxu1 %v958_v45  ;;  %815 = vmatprep.mubr.msk.f32.mxu1 %vm959_vm2, %v958_v45  ;;  %p896_p4 = por (%p178_p0), %p895_p3, %p894_p2 }
  0xe3   : > { %792 = vmatpush3.msra.mxu1 %v1103_v13  ;;  %818 = vmatprep.subr.mxu0 %v958_v45 }
  0xe4   : > { %793 = vmatprep.subr.mxu1 %v958_v45  ;;  %819 = vmatpush3.msra.mxu0 %v1178_v29  ;;  %p897_p5 = pnand (%p178_p0), %p896_p4, %p890_p1 }
  0xe5   : > { %794 = vmatpush3.msra.mxu1 %v1098_v12  ;;  %820 = vmatprep.subr.mxu0 %v958_v45 }
  0xe6   : > { %795 = vmatprep.subr.mxu1 %v958_v45  ;;  %821 = vmatpush3.msra.mxu0 %v1173_v28 }
  0xe7   : > { %796 = vmatpush3.msra.mxu1 %v1093_v11  ;;  %822 = vmatprep.subr.mxu0 %v958_v45 }
  0xe8   : > { %797 = vmatprep.subr.mxu1 %v958_v45  ;;  %823 = vmatpush3.msra.mxu0 %v1168_v27 }
  0xe9   : > { %798 = vmatpush3.msra.mxu1 %v1088_v10  ;;  %824 = vmatprep.subr.mxu0 %v958_v45 }
  0xea   : > { %799 = vmatprep.subr.mxu1 %v958_v45  ;;  %825 = vmatpush3.msra.mxu0 %v1163_v26 }
  0xeb   : > { %800 = vmatpush3.msra.mxu1 %v1083_v9  ;;  %826 = vmatprep.mubr.msk.f32.mxu0 %vm959_vm2, %v958_v45 }
  0xec   : > { %801 = vmatprep.subr.mxu1 %v958_v45  ;;  %865 = vset.pattern.permute.xlu1 %v960_v46 }
  0xed   : > { %802 = vmatpush3.msra.mxu1 %v1078_v8  ;;  %866 = vset.pattern.permute.xlu0 %v960_v46 }
  0xee   : > { %803 = vmatprep.subr.mxu1 %v958_v45  ;;  %323 = vperm.xlu1 %865, %v1158_v25  }
  0xef   : > { %804 = vmatpush3.msra.mxu1 %v1073_v7 }
  0xf0   : > { %805 = vmatprep.subr.mxu1 %v958_v45 }
  0xf1   : > { %806 = vmatpush3.msra.mxu1 %v1068_v6 }
  0xf2   : > { %807 = vmatprep.subr.mxu1 %v958_v45 }
  0xf3   : > { %808 = vmatpush3.msra.mxu1 %v1063_v5 }
  0xf4   : > { %809 = vmatprep.subr.mxu1 %v958_v45 }
  0xf5   : > { %810 = vmatpush3.msra.mxu1 %v1058_v4 }
  0xf6   : > { %811 = vmatprep.subr.mxu1 %v958_v45 }
  0xf7   : > { %812 = vmatpush3.msra.mxu1 %v1053_v3 }
  0xf8   : > { %813 = vmatprep.subr.mxu1 %v958_v45 }
  0xf9   : > { %814 = vmatpush3.msra.mxu1 %v1048_v2 }
  0xfa   : > { %816 = vmatmul.mubr.f32.vlgmr.msra.gmra.mxu1 %v947_v39 }
 0x169   : > { %v324_v34 = vpop.permute.xlu1 %323 }
 0x1a1   : > { %v1292_v52 = vpop.f32.mrf.mxu0 }
 0x1a2   : > { %v273_v53 = vrot.slane %v1292_v52, %v272_v51 }
 0x1a3   : > { %v782_v55 = vpop.f32.mrf.mxu0 }
 0x1a4   : > { %v274_v56 = vcombine.high %v273_v53, %v273_v53  ;;  %v281_v57 = vrot.slane %v273_v53, %v272_v51  ;;  %v352_v55 = vsub.s32 1, %v271_v50 }
 0x1a6   : > { %v288_v58 = vrot.slane %v274_v56, %v272_v51  ;;  %v292_v59 = vrot.slane %v281_v57, %v291_v54 }
 0x1a8   : > { %v299_v60 = vadd.f32 %v292_v59, %v1217_v44  ;;  %v296_v61 = vrot.slane %v288_v58, %v291_v54 }
 0x1aa   : > { %867 = vtanh.f32 %v299_v60  ;;  %v300_v62 = vadd.f32 %v296_v61, %v1212_v42 }
 0x1ac   : > { %869 = vtanh.f32 %v300_v62 }
 0x1b7   : > { %v868_v63 = vpop.eup %867 }
 0x1b8   : > { %v309_v0 = vmul.f32 %v868_v63, %v1156_v24 }
 0x1b9   : > { %v870_v18 = vpop.eup %869 }
 0x1ba   : > { %v311_v31 = vsel %vm81_vm0, %v309_v0, 0.0  ;;  %v310_v32 = vmul.f32 %v870_v18, %v1156_v24 }
 0x1bb   : > { %312 = vadd.xlane.f32.xlu0 %v311_v31 }
 0x1bc   : > { %v314_v33 = vsel %vm81_vm0, %v310_v32, 0.0 }
 0x1bf   : > { %315 = vadd.xlane.f32.xlu0 %v314_v33 }
 0x244   : > { %v313_v35 = vpop.xlane.xlu0 %312 }
 0x245   : > { %v326_v40 = vadd.f32 %v324_v34, %v313_v35 }
 0x247   : > { %v333_v48 = vrot.slane %v326_v40, %v332_v38 }
 0x248   : > { %v316_v46 = vpop.xlane.xlu0 %315 }
 0x249   : > { %v327_v47 = vadd.f32 %v324_v34, %v316_v46 }
 0x24b   : > { %v337_v49 = vrot.slane %v327_v47, %v332_v38 }
 0x24d   : > { %v339_v51 = vsel %vm338_vm3, %v337_v49, %v333_v48 }
 0x24e   : > { %v342_v53 = vsel %vm341_vm4, %v339_v51, -inf }
 0x24f   : > { %343 = vmax.xlane.f32.xlu1 %v342_v53 }
 0x2d8   : > { %v344_v56 = vpop.xlane.xlu1 %343 }
 0x2d9   : > { %v349_v57 = vrot.slane %v344_v56, %v291_v54  ;;  %v353_v58 = vrot.slane %v344_v56, %v352_v55 }
 0x2db   : > { %v356_v59 = vsub.f32 %v326_v40, %v349_v57  ;;  %v357_v60 = vsub.f32 %v327_v47, %v353_v58 }
 0x2dd   : > { %v358_v61 = vmul.f32 1.442695, %v356_v59  ;;  %v360_v62 = vmul.f32 1.442695, %v357_v60 }
 0x2df   : > { %871 = vpow2.f32 %v358_v61 }
 0x2e0   : > { %873 = vpow2.f32 %v360_v62 }
 0x2ec   : > { %v872_v63 = vpop.eup %871 }
 0x2ed   : > { %v874_v0 = vpop.eup %873  ;;  %365 = vperm.xlu0 %866, %v872_v63  }
 0x2ee   : > { %368 = vperm.xlu1 %865, %v874_v0  }
 0x368   : > { %v366_v18 = vpop.permute.xlu0 %365 }
 0x369   : > { %v369_v31 = vpop.permute.xlu1 %368  ;;  %v373_v32 = vrot.slane %v366_v18, %v332_v38 }
 0x36a   : > { %v377_v33 = vrot.slane %v369_v31, %v332_v38 }
 0x36c   : > { %v378_v34 = vsel %vm338_vm3, %v377_v33, %v373_v32 }
 0x36d   : > { %v380_v50 = vsel %vm341_vm4, %v378_v34, 0.0 }
 0x36e   : > { %381 = vadd.xlane.f32.xlu0 %v380_v50 }
 0x3f7   : > { %v382_v35 = vpop.xlane.xlu0 %381 }
 0x3f8   : > { %v387_v40 = vrot.slane %v382_v35, %v291_v54  ;;  %v391_v46 = vrot.slane %v382_v35, %v352_v55 }
 0x3fa   : > { %875 = vrcp.f32 %v387_v40 }
 0x3fb   : > { %877 = vrcp.f32 %v391_v46 }
 0x407   : > { %v876_v47 = vpop.eup %875 }
 0x408   : > { %v395_v48 = vmul.f32 %v876_v47, %v872_v63  ;;  %v878_v49 = vpop.eup %877  ;;  %v497_v63 = vpop.f32.mrf.mxu1 }
 0x409   : > { %v397_v51 = vmul.f32 %v878_v49, %v874_v0 }
 0x40a   : > { %400 = vperm.xlu1 %865, %v395_v48   ;;  %v817_v31 = vpop.f32.mrf.mxu1 }
 0x40e   : > { %405 = vperm.xlu1 %865, %v397_v51  }
 0x412   : > { %262 = vrot.lane.b32.xlu1 %v1151_v23, %s962_s4 }
 0x485   : > { %v401_v53 = vpop.permute.xlu1 %400 }
 0x486   : > { %v408_v39 = vmul.f32 %v401_v53, %v1214_v43  ;;  %v634_v57 = vrot.slane %v401_v53, %v332_v38 }
 0x488   : > { %v411_v54 = vsel %vm410_vm5, %v408_v39, 0.0 }
 0x489   : > { %v412_v55 = vrot.slane %v411_v54, 4  ;;  %v406_v56 = vpop.permute.xlu1 %405 }
 0x48a   : > { %v409_v58 = vmul.f32 %v1209_v41, %v406_v56  ;;  %v638_v59 = vrot.slane %v406_v56, %v332_v38 }
 0x48b   : > { %v413_v60 = vadd.f32 %v412_v55, %v411_v54 }
 0x48c   : > { %v418_v61 = vsel %vm410_vm5, %v409_v58, 0.0  ;;  %v639_v62 = vsel %vm338_vm3, %v638_v59, %v634_v57 }
 0x48d   : > { %v414_v0 = vrot.slane %v413_v60, 2  ;;  %v419_v18 = vrot.slane %v418_v61, 4  ;;  %642 = vst.msk [vmem:[%s641_s8] sm:$0x3] %vm341_vm4, %v639_v62  ;;  %v263_v48 = vpop.permute.xlu1 %262 }
 0x48e   : > { %v265_v49 = vadd.f32 %v263_v48, %v1292_v52 }
 0x48f   : > { %v415_v32 = vadd.f32 %v414_v0, %v413_v60  ;;  %v420_v33 = vadd.f32 %v419_v18, %v418_v61 }
 0x491   : > { %v421_v34 = vrot.slane %v420_v33, 2  ;;  %v416_v35 = vrot.slane %v415_v32, 1 }
 0x493   : > { %v422_v50 = vadd.f32 %v421_v34, %v420_v33  ;;  %v417_v46 = vadd.f32 %v416_v35, %v415_v32 }
 0x495   : > { %v423_v40 = vrot.slane %v422_v50, 1 }
 0x497   : > { %v424_v47 = vadd.f32 %v423_v40, %v422_v50 }
 0x499   : > { %v427_v38 = vsel %vm338_vm3, %v424_v47, %v417_v46 }
 0x49a   : > { %428 = vrot.lane.b32.xlu1 %v427_v38, %s963_s18 }
 0x49e   : > { %502 = vrot.lane.b32.xlu1 %v265_v49, %s963_s18 }
 0x4a2   : > { %512 = vrot.lane.b32.xlu1 %v265_v49, %s962_s4 }
 0x50c   : > { %v429_v51 = vpop.permute.xlu1 %428 }
 0x50d   : > { %v498_v53 = vadd.f32 %v497_v63, %v429_v51 }
 0x510   : > { %v503_v39 = vpop.permute.xlu1 %502 }
 0x511   : > { %v505_v54 = vadd.f32 %v503_v39, %v498_v53 }
 0x513   : > { %v723_v55 = vmul.f32 -1.442695, %v505_v54 }
 0x514   : > { %v513_v59 = vpop.permute.xlu1 %512 }
 0x515   : > { %879 = vpow2.f32 %v723_v55 }
 0x522   : > { %v880_v56 = vpop.eup %879 }
 0x523   : > { %v509_v57 = vadd.f32 1.0, %v880_v56 }
 0x525   : > { %881 = vrcp.f32 %v509_v57 }
 0x532   : > { %v882_v58 = vpop.eup %881 }
 0x533   : > { %v515_v60 = vmul.f32 %v882_v58, %v513_v59  ;;  %v522_v0 = vsub.f32 1.0, %v882_v58 }
 0x535   : > { %517 = vrot.lane.b32.xlu1 %v515_v60, %s964_s1 }
 0x539   : > { %528 = vrot.lane.b32.xlu1 %v951_v1, %s962_s4 }
 0x5a7   : > { %v518_v52 = vpop.permute.xlu1 %517 }
 0x5a8   : > { %v520_v61 = vadd.f32 %v518_v52, %v498_v53 }
 0x5aa   : > { %883 = vtanh.f32 %v520_v61 }
 0x5ab   : > { %v529_v63 = vpop.permute.xlu1 %528 }
 0x5ac   : > { %v531_v31 = vmul.f32 %v882_v58, %v529_v63 }
 0x5b7   : > { %v884_v62 = vpop.eup %883 }
 0x5b8   : > { %524 = vrot.lane.b32.xlu0 %v884_v62, %s963_s18 }
 0x62a   : > { %v525_v18 = vpop.permute.xlu0 %524 }
 0x62b   : > { %v527_v32 = vmul.f32 %v525_v18, %v522_v0 }
 0x62d   : > { %v532_v33 = vadd.f32 %v531_v31, %v527_v32 }
 0x62f   : > { %540 = vrot.lane.b32.xlu1 %v532_v33, %s963_s18 }
 0x6a1   : > { %v541_v34 = vpop.permute.xlu1 %540  }
 0x6a2   : > { %827 = vmatmul.mubr.msk.f32.vlgmr.msra.gmra.mxu0 %vm81_vm0, %v541_v34  ;;  %665 = vst.msk [vmem:[#allocation5] sm:$0x3] (%p178_p0), %vm664_vm10, %v541_v34 }
 0x762   : > { %v610_v50 = vpop.f32.mrf.mxu0 }
 0x763   : > { %v611_v1 = vadd.f32 %v1183_v30, %v610_v50 }
 0x764   : > { %v828_v35 = vpop.f32.mrf.mxu0 }
 0x765   : > { %v615_v40 = vsel %vm614_vm6, %v611_v1, -inf }
 0x766   : > { %616 = vmax.xlane.f32.xlu1 %v615_v40 }
 0x7ef   : > { %v617_v46 = vpop.xlane.xlu1 %616 }
 0x7f0   : > { %v618_v47 = vsub.f32 %v611_v1, %v617_v46  ;;  %vm643_vm7 = vcmp.eq.f32.partialorder %v611_v1, %v617_v46 }
 0x7f1   : > { %v644_v48 = vsel %vm643_vm7, %v1203_v37, 128 }
 0x7f2   : > { %v619_v38 = vmul.f32 1.442695, %v618_v47  ;;  %v645_v49 = vsel %vm614_vm6, %v644_v48, 2147483647 }
 0x7f3   : > { %v647_v51 = vshra.s32 %v645_v49, 16  ;;  %v646_v55 = vand.u32 65535, %v645_v49 }
 0x7f4   : > { %885 = vpow2.f32 %v619_v38 }
 0x7f5   : > { %v649_v53 = vcvt.s32.f32 %v647_v51  ;;  %v648_v57 = vcvt.s32.f32 %v646_v55 }
 0x7f7   : > { %650 = vmin.xlane.f32.xlu0 %v649_v53 }
 0x801   : > { %v886_v39 = vpop.eup %885 }
 0x802   : > { %v621_v54 = vsel %vm614_vm6, %v886_v39, 0.0 }
 0x803   : > { %622 = vadd.xlane.f32.xlu1 %v621_v54 }
 0x880   : > { %v651_v56 = vpop.xlane.xlu0 %650 }
 0x881   : > { %vm652_vm8 = vcmp.eq.f32.partialorder %v649_v53, %v651_v56  ;;  %v657_v63 = vcvt.f32.s32 %v651_v56 }
 0x882   : > { %v653_v58 = vsel %vm652_vm8, %v648_v57, inf }
 0x883   : > { %654 = vmin.xlane.f32.xlu1 %v653_v58  ;;  %v658_v18 = vshll.u32 %v657_v63, 16 }
 0x88c   : > { %v623_v59 = vpop.xlane.xlu1 %622 }
 0x88d   : > { %887 = vlog2.f32 %v623_v59 }
 0x89a   : > { %v888_v60 = vpop.eup %887 }
 0x89b   : > { %v625_v52 = vmul.f32 0.6931472, %v888_v60 }
 0x89d   : > { %v626_v61 = vadd.f32 %v625_v52, %v617_v46 }
 0x89f   : > { %v627_v62 = vsub.f32 %v611_v1, %v626_v61  ;;  %v1365_v1 = vmov %v541_v34 }
 0x8a1   : > { %630 = vst [vmem:[%s629_s5] sm:$0x3] %v627_v62 }
 0x90c   : > { %v655_v0 = vpop.xlane.xlu1 %654 }
 0x90d   : > { %v656_v31 = vcvt.f32.s32 %v655_v0 }
 0x90e   :  { %180 = sbr.rel (!%p178_p0) target bundleno = 216 (0xd8), region = 89 }
 0x90f   : > { %v659_v32 = vadd.s32 %v658_v18, %v656_v31 }
 0x911   : > { %vm660_vm9 = vcmp.eq.s32.totalorder %v1203_v37, %v659_v32 }
 0x912   : > { %v727_v39 = vsel %vm660_vm9, 1.0, %v958_v45  }
 0x913   :  { %900 = shalt.err (!%p897_p5)
}
 0x914   :  { %s966_s7 = smov 32   ;;  %s967_s21 = smov 2  }
 0x915   :  { %677 = dma.vmem_to_hbm [thread:$0]  %s672_s6, 480, %s1362_s11, [#allocation4], %s966_s7, %s966_s7, %s967_s21  }
 0x916   :  { %s968_s24 = smov [#allocation5]  }
 0x917   :  { %s684_s25 = sshll.u32 %s968_s24, 4  ;;  %s685_s25 = int_to_ptr.vmem [resolvable:$true] %s684_s25 }
 0x918   :  { %s909_s13 = scalar_lea.vmem %s685_s25, 32  ;;  %p914_p7 = scmp.lt.s32.totalorder %s685_s25, %s685_s25 }
 0x919   :  { %p910_p6 = scmp.ne.s32.totalorder %s685_s25, %s909_s13  ;;  %p915_p8 = scmp.lt.s32.totalorder %s909_s13, %s909_s13 }
 0x91b   :  { %p916_p9 = por %p915_p8, %p914_p7 }
 0x91d   :  { %p917_p10 = pnand %p916_p9, %p910_p6 }
 0x91f   :  { %920 = shalt.err (!%p917_p10)
}
 0x920   :  { %687 = dma.vmem_to_hbm [thread:$0]  %s685_s25, 32, %s1363_s12, [#allocation6]  }
 0x921   :  { %941 = dma.done.wait [#allocation4], 480  }
 0x922   :  { %942 = vsyncadd [#allocation4], 4294966816 }
 0x923   :  { %943 = dma.done.wait [#allocation6], 32  }
 0x924   :  { %944 = vsyncadd [#allocation6], 4294967264 }
 0x925   :  { %698 = vsyncpa [#allocation4], 1 }
 0x926   :  { %699 = vsyncpa [#allocation6], 1 }

</bundles_post_ra>
